<compile_context>
chip_gen: v6e
topology: v6e:2x2x1
jax: 0.10.0
libtpu: 0.0.40
codegen_flags: <defaults>
</compile_context>

<pallas_src>
import jax
import jax.numpy as jnp
from jax.experimental import pallas as pl
from jax.experimental.pallas import tpu as pltpu


LANE = 128          # TPU lane width: hidden / output dims are padded to this
NEG_BIG = -1e30     # bias for padded logit columns -> softmax weight is exactly 0


# ----------------------------------------------------------------------------- kernel
def actionnet_kernel(x_ref, w1_ref, b1_ref,
                     wq2_ref, bq2_ref,
                     wfc_ref, bfc_ref,
                     wa_ref, ba_ref,
                     pi_ref, logits_ref, ent_ref, qs_ref):
    x = x_ref[...]                                             # (bt, F + N*E) f32

    # Fused layer-1 of Env + QNet surrogates: one wide MXU push (N = 2*Hp).
    h2 = jnp.dot(x, w1_ref[...], preferred_element_type=jnp.float32) + b1_ref[...]
    h2 = jnp.maximum(h2, 0.0)                                  # (bt, 2*Hp)
    hp = w1_ref.shape[1] // 2
    stim = h2[:, :hp]                                          # Env surrogate output
    qh = h2[:, hp:]                                            # QNet hidden

    # Qs = qNet layer-2
    qs = jnp.dot(qh, wq2_ref[...], preferred_element_type=jnp.float32) + bq2_ref[...]

    # x = relu(fc(stim))
    xfc = jnp.maximum(
        jnp.dot(stim, wfc_ref[...], preferred_element_type=jnp.float32) + bfc_ref[...],
        0.0)

    # logits = actionNet(x); padded columns carry NEG_BIG bias.
    logits = jnp.dot(xfc, wa_ref[...], preferred_element_type=jnp.float32) + ba_ref[...]

    # pi = softmax(logits, dim=1), numerically stable.
    m = jnp.max(logits, axis=1, keepdims=True)
    e = jnp.exp(logits - m)                                    # padded cols -> exactly 0
    denom = jnp.sum(e, axis=1, keepdims=True)
    pi = e * pl.reciprocal(denom, approx=False)

    # entropy = (log(pi + 1e-5) * pi).sum(dim=1); padded cols have pi == 0 -> contribute 0.
    entropy = jnp.sum(jnp.log(pi + 1e-5) * pi, axis=1, keepdims=True)   # (bt, 1)

    pi_ref[...] = pi                                           # lane-dense (bt, 128)
    logits_ref[...] = logits                                   # logits.detach(): same value
    ent_ref[...] = jnp.broadcast_to(entropy, ent_ref.shape)    # lane-dense slab
    qs_ref[...] = qs


# ----------------------------------------------------------------------------- wrapper
def _pad_cols(a, n, value=0.0):
    return jnp.pad(a, ((0, 0), (0, n - a.shape[1])), constant_values=value)


def _pad_rows(a, n):
    return jnp.pad(a, ((0, n - a.shape[0]), (0, 0)))


def _round_up(x, m):
    return ((x + m - 1) // m) * m


def pack_params(params, n_ents, hp, out_pad):
    """Fuse / pad raw ActionNet params for the kernel (done once in the wrapper)."""
    inv_n = jnp.float32(1.0 / n_ents)
    # Fold the entity mean into the weight: tile (we_e / N) over the N entity slots.
    we_e_t = jnp.tile(params["we_e"] * inv_n, (n_ents, 1))        # (N*E, h)
    wq_e_t = jnp.tile(params["wq1_e"] * inv_n, (n_ents, 1))       # (N*E, h)
    w1_env = jnp.concatenate([params["we_f"], we_e_t], axis=0)    # (F+N*E, h)
    w1_q = jnp.concatenate([params["wq1_f"], wq_e_t], axis=0)     # (F+N*E, h)
    # Stack Env + QNet layer-1 into one (F+N*E, 2*hp) weight (zero-padded columns).
    w1 = jnp.concatenate([_pad_cols(w1_env, hp), _pad_cols(w1_q, hp)], axis=1)
    b1 = jnp.concatenate([_pad_cols(params["be"], hp), _pad_cols(params["bq1"], hp)], axis=1)

    wq2 = _pad_cols(_pad_rows(params["wq2"], hp), out_pad)
    bq2 = _pad_cols(params["bq2"], out_pad)
    wfc = _pad_cols(_pad_rows(params["wfc"], hp), hp)
    bfc = _pad_cols(params["bfc"], hp)
    wa = _pad_cols(_pad_rows(params["wa"], hp), out_pad)
    ba = _pad_cols(params["ba"], out_pad, value=NEG_BIG)          # padded logits -> -1e30
    return dict(w1=w1, b1=b1, wq2=wq2, bq2=bq2, wfc=wfc, bfc=bfc, wa=wa, ba=ba)


def actionnet_forward(flat, ents, params, *, max_block_b=512):
    B, _ = flat.shape
    _, N, E = ents.shape
    h = params["wfc"].shape[0]
    out_dim = params["wa"].shape[1]
    hp = _round_up(h, LANE)                 # hidden padded to full lanes
    out_pad = _round_up(out_dim, LANE)      # output padded to full lanes

    packed = pack_params(params, N, hp, out_pad)

    # Fold entity mean into the contraction: single input (B, F + N*E).
    x_in = jnp.concatenate(
        [flat.astype(jnp.float32), ents.reshape(B, N * E).astype(jnp.float32)], axis=1)

    # Batch tiling: whole batch if small; otherwise 8-aligned tiles sized well under the
    # v7x 32 MiB scoped-VMEM budget (weights + a 512-row activation/output block << 4 MiB).
    bt = B if B <= max_block_b else max_block_b
    nb = pl.cdiv(B, bt)
    b_padded = nb * bt
    if b_padded != B:
        x_in = jnp.pad(x_in, ((0, b_padded - B), (0, 0)))
    kin = x_in.shape[1]

    def rep(arr):                           # weights: replicated across the batch grid
        return pl.BlockSpec(arr.shape, lambda i: (0, 0))

    def batch_spec(width):                  # activations/outputs: tiled over batch
        return pl.BlockSpec((bt, width), lambda i: (i, 0))

    out_shape = tuple(jax.ShapeDtypeStruct((b_padded, out_pad), jnp.float32)
                      for _ in range(4))

    pi_p, logits_p, ent_p, qs_p = pl.pallas_call(
        actionnet_kernel,
        grid=(nb,),
        in_specs=[
            batch_spec(kin),
            rep(packed["w1"]), rep(packed["b1"]),
            rep(packed["wq2"]), rep(packed["bq2"]),
            rep(packed["wfc"]), rep(packed["bfc"]),
            rep(packed["wa"]), rep(packed["ba"]),
        ],
        out_specs=tuple(batch_spec(out_pad) for _ in range(4)),
        out_shape=out_shape,
        compiler_params=pltpu.CompilerParams(
            dimension_semantics=("parallel",)),    # shards batch tiles across v7x's 2 TCs
    )(x_in, packed["w1"], packed["b1"], packed["wq2"], packed["bq2"],
      packed["wfc"], packed["bfc"], packed["wa"], packed["ba"])

    pi = pi_p[:B, :out_dim]
    logits = logits_p[:B, :out_dim]
    entropy = ent_p[:B, 0]
    qs = qs_p[:B, :out_dim]
    return pi, logits, entropy, qs


# ----------------------------------------------------------------------------- params / reference
def make_params(key, flat_dim, ent_dim, h, out_dim):
    ks = jax.random.split(key, 12)
    s = 0.1
    return {
        # Env surrogate
        "we_f":  s * jax.random.normal(ks[0], (flat_dim, h), jnp.float32),
        "we_e":  s * jax.random.normal(ks[1], (ent_dim, h), jnp.float32),
        "be":    s * jax.random.normal(ks[2], (1, h), jnp.float32),
        # QNet surrogate
        "wq1_f": s * jax.random.normal(ks[3], (flat_dim, h), jnp.float32),
        "wq1_e": s * jax.random.normal(ks[4], (ent_dim, h), jnp.float32),
        "bq1":   s * jax.random.normal(ks[5], (1, h), jnp.float32),
        "wq2":   s * jax.random.normal(ks[6], (h, out_dim), jnp.float32),
        "bq2":   s * jax.random.normal(ks[7], (1, out_dim), jnp.float32),
        # self.fc : Linear(h, h)
        "wfc":   s * jax.random.normal(ks[8], (h, h), jnp.float32),
        "bfc":   s * jax.random.normal(ks[9], (1, h), jnp.float32),
        # self.actionNet : Linear(h, outDim)
        "wa":    s * jax.random.normal(ks[10], (h, out_dim), jnp.float32),
        "ba":    s * jax.random.normal(ks[11], (1, out_dim), jnp.float32),
    }


def ref_forward(flat, ents, p):
    # Pure-JAX reference of the same math (for correctness check).
    em = jnp.mean(ents, axis=1)
    stim = jax.nn.relu(flat @ p["we_f"] + em @ p["we_e"] + p["be"])
    qh = jax.nn.relu(flat @ p["wq1_f"] + em @ p["wq1_e"] + p["bq1"])
    qs = qh @ p["wq2"] + p["bq2"]
    x = jax.nn.relu(stim @ p["wfc"] + p["bfc"])
    logits = x @ p["wa"] + p["ba"]
    pi = jax.nn.softmax(logits, axis=1)
    entropy = jnp.sum(jnp.log(pi + 1e-5) * pi, axis=1)
    return pi, logits, entropy, qs


if __name__ == "__main__":
    B, FLAT_DIM, N_ENTS, ENT_DIM = 2, 16, 8, 11
    HIDDEN, OUT_DIM = 32, 2

    key = jax.random.PRNGKey(0)
    k_flat, k_ents, k_params = jax.random.split(key, 3)

    flat = jax.random.normal(k_flat, (B, FLAT_DIM), jnp.float32)
    ents = jax.random.normal(k_ents, (B, N_ENTS, ENT_DIM), jnp.float32)
    params = make_params(k_params, FLAT_DIM, ENT_DIM, HIDDEN, OUT_DIM)

    pi, logits, entropy, qs = actionnet_forward(flat, ents, params)
    jax.block_until_ready((pi, logits, entropy, qs))

    pi_r, logits_r, entropy_r, qs_r = ref_forward(flat, ents, params)
    assert jnp.allclose(pi, pi_r, atol=1e-4), "pi mismatch"
    assert jnp.allclose(logits, logits_r, atol=1e-4), "logits mismatch"
    assert jnp.allclose(entropy, entropy_r, atol=1e-4), "entropy mismatch"
    assert jnp.allclose(qs, qs_r, atol=1e-4), "Qs mismatch"

    print("KERNEL_OK")
</pallas_src>

<mosaic_0001>
module attributes {stable_mosaic.version = 11 : i64} {
  func.func @actionnet_kernel(%arg0: i32, %arg1: memref<2x104xf32, #tpu.memory_space<vmem>>, %arg2: memref<104x256xf32, #tpu.memory_space<vmem>>, %arg3: memref<1x256xf32, #tpu.memory_space<vmem>>, %arg4: memref<128x128xf32, #tpu.memory_space<vmem>>, %arg5: memref<1x128xf32, #tpu.memory_space<vmem>>, %arg6: memref<128x128xf32, #tpu.memory_space<vmem>>, %arg7: memref<1x128xf32, #tpu.memory_space<vmem>>, %arg8: memref<128x128xf32, #tpu.memory_space<vmem>>, %arg9: memref<1x128xf32, #tpu.memory_space<vmem>>, %arg10: memref<2x128xf32, #tpu.memory_space<vmem>>, %arg11: memref<2x128xf32, #tpu.memory_space<vmem>>, %arg12: memref<2x128xf32, #tpu.memory_space<vmem>>, %arg13: memref<2x128xf32, #tpu.memory_space<vmem>>) attributes {dimension_semantics = [#tpu.dimension_semantics<parallel>], iteration_bounds = array<i64: 1>, scalar_prefetch = 0 : i64, scratch_operands = 0 : i64, tpu.core_type = #tpu.core_type<tc>, window_params = [{transform_indices = @transform_0, window_bounds = array<i64: 2, 104>}, {pipeline_mode = #tpu.pipeline_mode<synchronous>, transform_indices = @transform_1, window_bounds = array<i64: 104, 256>}, {pipeline_mode = #tpu.pipeline_mode<synchronous>, transform_indices = @transform_2, window_bounds = array<i64: 1, 256>}, {pipeline_mode = #tpu.pipeline_mode<synchronous>, transform_indices = @transform_3, window_bounds = array<i64: 128, 128>}, {pipeline_mode = #tpu.pipeline_mode<synchronous>, transform_indices = @transform_4, window_bounds = array<i64: 1, 128>}, {pipeline_mode = #tpu.pipeline_mode<synchronous>, transform_indices = @transform_5, window_bounds = array<i64: 128, 128>}, {pipeline_mode = #tpu.pipeline_mode<synchronous>, transform_indices = @transform_6, window_bounds = array<i64: 1, 128>}, {pipeline_mode = #tpu.pipeline_mode<synchronous>, transform_indices = @transform_7, window_bounds = array<i64: 128, 128>}, {pipeline_mode = #tpu.pipeline_mode<synchronous>, transform_indices = @transform_8, window_bounds = array<i64: 1, 128>}, {transform_indices = @transform_9, window_bounds = array<i64: 2, 128>}, {transform_indices = @transform_10, window_bounds = array<i64: 2, 128>}, {transform_indices = @transform_11, window_bounds = array<i64: 2, 128>}, {transform_indices = @transform_12, window_bounds = array<i64: 2, 128>}]} {
    %c0 = arith.constant 0 : index
    %c0_0 = arith.constant 0 : index
    %0 = vector.load %arg1[%c0, %c0_0] : memref<2x104xf32, #tpu.memory_space<vmem>>, vector<2x104xf32>
    %c0_1 = arith.constant 0 : index
    %c0_2 = arith.constant 0 : index
    %1 = vector.load %arg2[%c0_1, %c0_2] : memref<104x256xf32, #tpu.memory_space<vmem>>, vector<104x256xf32>
    %cst = arith.constant dense<0.000000e+00> : vector<2x256xf32>
    %2 = tpu.matmul %0, %1, %cst {dimension_numbers = #tpu.dot_dimension_numbers<[1], [0], [0], [1], [0, 0, 1, 1], [], []>} : vector<2x104xf32>, vector<104x256xf32>, vector<2x256xf32> -> vector<2x256xf32>
    %c0_3 = arith.constant 0 : index
    %c0_4 = arith.constant 0 : index
    %3 = vector.load %arg3[%c0_3, %c0_4] : memref<1x256xf32, #tpu.memory_space<vmem>>, vector<1x256xf32>
    %4 = vector.broadcast %3 : vector<1x256xf32> to vector<2x256xf32>
    %5 = arith.addf %2, %4 : vector<2x256xf32>
    %cst_5 = arith.constant 0.000000e+00 : f32
    %6 = vector.broadcast %cst_5 : f32 to vector<2x256xf32>
    %7 = arith.maximumf %5, %6 : vector<2x256xf32>
    %8 = vector.extract_strided_slice %7 {offsets = [0, 0], sizes = [2, 128], strides = [1, 1]} : vector<2x256xf32> to vector<2x128xf32>
    %9 = vector.extract_strided_slice %7 {offsets = [0, 128], sizes = [2, 128], strides = [1, 1]} : vector<2x256xf32> to vector<2x128xf32>
    %c0_6 = arith.constant 0 : index
    %c0_7 = arith.constant 0 : index
    %10 = vector.load %arg4[%c0_6, %c0_7] : memref<128x128xf32, #tpu.memory_space<vmem>>, vector<128x128xf32>
    %cst_8 = arith.constant dense<0.000000e+00> : vector<2x128xf32>
    %11 = tpu.matmul %9, %10, %cst_8 {dimension_numbers = #tpu.dot_dimension_numbers<[1], [0], [0], [1], [0, 0, 1, 1], [], []>} : vector<2x128xf32>, vector<128x128xf32>, vector<2x128xf32> -> vector<2x128xf32>
    %c0_9 = arith.constant 0 : index
    %c0_10 = arith.constant 0 : index
    %12 = vector.load %arg5[%c0_9, %c0_10] : memref<1x128xf32, #tpu.memory_space<vmem>>, vector<1x128xf32>
    %13 = vector.broadcast %12 : vector<1x128xf32> to vector<2x128xf32>
    %14 = arith.addf %11, %13 : vector<2x128xf32>
    %c0_11 = arith.constant 0 : index
    %c0_12 = arith.constant 0 : index
    %15 = vector.load %arg6[%c0_11, %c0_12] : memref<128x128xf32, #tpu.memory_space<vmem>>, vector<128x128xf32>
    %cst_13 = arith.constant dense<0.000000e+00> : vector<2x128xf32>
    %16 = tpu.matmul %8, %15, %cst_13 {dimension_numbers = #tpu.dot_dimension_numbers<[1], [0], [0], [1], [0, 0, 1, 1], [], []>} : vector<2x128xf32>, vector<128x128xf32>, vector<2x128xf32> -> vector<2x128xf32>
    %c0_14 = arith.constant 0 : index
    %c0_15 = arith.constant 0 : index
    %17 = vector.load %arg7[%c0_14, %c0_15] : memref<1x128xf32, #tpu.memory_space<vmem>>, vector<1x128xf32>
    %18 = vector.broadcast %17 : vector<1x128xf32> to vector<2x128xf32>
    %19 = arith.addf %16, %18 : vector<2x128xf32>
    %cst_16 = arith.constant 0.000000e+00 : f32
    %20 = vector.broadcast %cst_16 : f32 to vector<2x128xf32>
    %21 = arith.maximumf %19, %20 : vector<2x128xf32>
    %c0_17 = arith.constant 0 : index
    %c0_18 = arith.constant 0 : index
    %22 = vector.load %arg8[%c0_17, %c0_18] : memref<128x128xf32, #tpu.memory_space<vmem>>, vector<128x128xf32>
    %cst_19 = arith.constant dense<0.000000e+00> : vector<2x128xf32>
    %23 = tpu.matmul %21, %22, %cst_19 {dimension_numbers = #tpu.dot_dimension_numbers<[1], [0], [0], [1], [0, 0, 1, 1], [], []>} : vector<2x128xf32>, vector<128x128xf32>, vector<2x128xf32> -> vector<2x128xf32>
    %c0_20 = arith.constant 0 : index
    %c0_21 = arith.constant 0 : index
    %24 = vector.load %arg9[%c0_20, %c0_21] : memref<1x128xf32, #tpu.memory_space<vmem>>, vector<1x128xf32>
    %25 = vector.broadcast %24 : vector<1x128xf32> to vector<2x128xf32>
    %26 = arith.addf %23, %25 : vector<2x128xf32>
    %cst_22 = arith.constant dense<0xFF800000> : vector<2xf32>
    %27 = vector.multi_reduction <maximumf>, %26, %cst_22 [1] : vector<2x128xf32> to vector<2xf32>
    %28 = vector.shape_cast %27 : vector<2xf32> to vector<2x1xf32>
    %29 = vector.broadcast %28 : vector<2x1xf32> to vector<2x128xf32>
    %30 = arith.subf %26, %29 : vector<2x128xf32>
    %31 = math.exp %30 : vector<2x128xf32>
    %cst_23 = arith.constant dense<0.000000e+00> : vector<2xf32>
    %32 = vector.multi_reduction <add>, %31, %cst_23 [1] : vector<2x128xf32> to vector<2xf32>
    %33 = vector.shape_cast %32 : vector<2xf32> to vector<2x1xf32>
    %34 = tpu.reciprocal %33 : vector<2x1xf32> -> vector<2x1xf32>
    %35 = vector.broadcast %34 : vector<2x1xf32> to vector<2x128xf32>
    %36 = arith.mulf %31, %35 : vector<2x128xf32>
    %cst_24 = arith.constant 9.99999974E-6 : f32
    %37 = vector.broadcast %cst_24 : f32 to vector<2x128xf32>
    %38 = arith.addf %36, %37 : vector<2x128xf32>
    %39 = math.log %38 : vector<2x128xf32>
    %40 = arith.mulf %39, %36 : vector<2x128xf32>
    %cst_25 = arith.constant dense<0.000000e+00> : vector<2xf32>
    %41 = vector.multi_reduction <add>, %40, %cst_25 [1] : vector<2x128xf32> to vector<2xf32>
    %42 = vector.shape_cast %41 : vector<2xf32> to vector<2x1xf32>
    %c0_26 = arith.constant 0 : index
    %c0_27 = arith.constant 0 : index
    %43 = vector.load %arg10[%c0_26, %c0_27] : memref<2x128xf32, #tpu.memory_space<vmem>>, vector<2x128xf32>
    tpu.vector_store %arg10[%c0_26, %c0_27], %36 {strides = array<i32>} : memref<2x128xf32, #tpu.memory_space<vmem>>, vector<2x128xf32>,
    %c0_28 = arith.constant 0 : index
    %c0_29 = arith.constant 0 : index
    %44 = vector.load %arg11[%c0_28, %c0_29] : memref<2x128xf32, #tpu.memory_space<vmem>>, vector<2x128xf32>
    tpu.vector_store %arg11[%c0_28, %c0_29], %26 {strides = array<i32>} : memref<2x128xf32, #tpu.memory_space<vmem>>, vector<2x128xf32>,
    %45 = vector.shape_cast %42 : vector<2x1xf32> to vector<2x1xf32>
    %46 = vector.broadcast %45 : vector<2x1xf32> to vector<2x128xf32>
    %c0_30 = arith.constant 0 : index
    %c0_31 = arith.constant 0 : index
    %47 = vector.load %arg12[%c0_30, %c0_31] : memref<2x128xf32, #tpu.memory_space<vmem>>, vector<2x128xf32>
    tpu.vector_store %arg12[%c0_30, %c0_31], %46 {strides = array<i32>} : memref<2x128xf32, #tpu.memory_space<vmem>>, vector<2x128xf32>,
    %c0_32 = arith.constant 0 : index
    %c0_33 = arith.constant 0 : index
    %48 = vector.load %arg13[%c0_32, %c0_33] : memref<2x128xf32, #tpu.memory_space<vmem>>, vector<2x128xf32>
    tpu.vector_store %arg13[%c0_32, %c0_33], %14 {strides = array<i32>} : memref<2x128xf32, #tpu.memory_space<vmem>>, vector<2x128xf32>,
    return
  }
  func.func @transform_0(%arg0: i32) -> (i32, i32) {
    %c0_i32 = arith.constant 0 : i32
    %c0_i32_0 = arith.constant 0 : i32
    return %arg0, %c0_i32 : i32, i32
  }
  func.func @transform_1(%arg0: i32) -> (i32, i32) {
    %c0_i32 = arith.constant 0 : i32
    %c0_i32_0 = arith.constant 0 : i32
    %c0_i32_1 = arith.constant 0 : i32
    return %c0_i32, %c0_i32_0 : i32, i32
  }
  func.func @transform_2(%arg0: i32) -> (i32, i32) {
    %c0_i32 = arith.constant 0 : i32
    %c0_i32_0 = arith.constant 0 : i32
    %c0_i32_1 = arith.constant 0 : i32
    return %c0_i32, %c0_i32_0 : i32, i32
  }
  func.func @transform_3(%arg0: i32) -> (i32, i32) {
    %c0_i32 = arith.constant 0 : i32
    %c0_i32_0 = arith.constant 0 : i32
    %c0_i32_1 = arith.constant 0 : i32
    return %c0_i32, %c0_i32_0 : i32, i32
  }
  func.func @transform_4(%arg0: i32) -> (i32, i32) {
    %c0_i32 = arith.constant 0 : i32
    %c0_i32_0 = arith.constant 0 : i32
    %c0_i32_1 = arith.constant 0 : i32
    return %c0_i32, %c0_i32_0 : i32, i32
  }
  func.func @transform_5(%arg0: i32) -> (i32, i32) {
    %c0_i32 = arith.constant 0 : i32
    %c0_i32_0 = arith.constant 0 : i32
    %c0_i32_1 = arith.constant 0 : i32
    return %c0_i32, %c0_i32_0 : i32, i32
  }
  func.func @transform_6(%arg0: i32) -> (i32, i32) {
    %c0_i32 = arith.constant 0 : i32
    %c0_i32_0 = arith.constant 0 : i32
    %c0_i32_1 = arith.constant 0 : i32
    return %c0_i32, %c0_i32_0 : i32, i32
  }
  func.func @transform_7(%arg0: i32) -> (i32, i32) {
    %c0_i32 = arith.constant 0 : i32
    %c0_i32_0 = arith.constant 0 : i32
    %c0_i32_1 = arith.constant 0 : i32
    return %c0_i32, %c0_i32_0 : i32, i32
  }
  func.func @transform_8(%arg0: i32) -> (i32, i32) {
    %c0_i32 = arith.constant 0 : i32
    %c0_i32_0 = arith.constant 0 : i32
    %c0_i32_1 = arith.constant 0 : i32
    return %c0_i32, %c0_i32_0 : i32, i32
  }
  func.func @transform_9(%arg0: i32) -> (i32, i32) {
    %c0_i32 = arith.constant 0 : i32
    %c0_i32_0 = arith.constant 0 : i32
    return %arg0, %c0_i32 : i32, i32
  }
  func.func @transform_10(%arg0: i32) -> (i32, i32) {
    %c0_i32 = arith.constant 0 : i32
    %c0_i32_0 = arith.constant 0 : i32
    return %arg0, %c0_i32 : i32, i32
  }
  func.func @transform_11(%arg0: i32) -> (i32, i32) {
    %c0_i32 = arith.constant 0 : i32
    %c0_i32_0 = arith.constant 0 : i32
    return %arg0, %c0_i32 : i32, i32
  }
  func.func @transform_12(%arg0: i32) -> (i32, i32) {
    %c0_i32 = arith.constant 0 : i32
    %c0_i32_0 = arith.constant 0 : i32
    return %arg0, %c0_i32 : i32, i32
  }
}

</mosaic_0001>

<bundles_post_ra>
// kernel: tpu_custom_call.1
= control target key start
LH: loop header
LB: loop body
LE: loop exit
PB: predicated region body
PF: predicated region fallthrough
CT: control target
= control target key end

     0   :  { %18 = vsyncpa [#allocation3], 0  ;;  %s1141_s0 = inlined_call_operand.hbm [shape: f32[2,104], index: 0, kind: input, shape index: {}]   ;;  %s1142_s1 = inlined_call_operand.hbm [shape: f32[104,256], index: 1, kind: input, shape index: {}]   ;;  %s1143_s2 = inlined_call_operand.vmem [shape: f32[1,256], index: 2, kind: input, shape index: {}]   ;;  %s1144_s3 = inlined_call_operand.hbm [shape: f32[128,128], index: 3, kind: input, shape index: {}]   ;;  %s1145_s4 = inlined_call_operand.vmem [shape: f32[1,128], index: 4, kind: input, shape index: {}]   ;;  %s1146_s5 = inlined_call_operand.hbm [shape: f32[128,128], index: 5, kind: input, shape index: {}]   ;;  %s1147_s6 = inlined_call_operand.vmem [shape: f32[1,128], index: 6, kind: input, shape index: {}]   ;;  %s1148_s7 = inlined_call_operand.hbm [shape: f32[128,128], index: 7, kind: input, shape index: {}]   ;;  %s1149_s8 = inlined_call_operand.vmem [shape: f32[1,128], index: 8, kind: input, shape index: {}]   ;;  %s1150_s9 = inlined_call_operand.hbm [shape: f32[2,128], index: 9, kind: output, shape index: {0}]   ;;  %s1151_s10 = inlined_call_operand.hbm [shape: f32[2,128], index: 10, kind: output, shape index: {1}]   ;;  %s1152_s11 = inlined_call_operand.hbm [shape: f32[2,128], index: 11, kind: output, shape index: {2}]   ;;  %s1153_s12 = inlined_call_operand.hbm [shape: f32[2,128], index: 12, kind: output, shape index: {3}]  }
   0x1   :  { %19 = vsyncpa [#allocation6], 0 }
   0x2   :  { %20 = vsyncpa [#allocation9], 0 }
   0x3   :  { %21 = vsyncpa [#allocation4], 0 }
   0x4   :  { %22 = vsyncpa [#allocation13], 0 }
   0x5   :  { %23 = vsyncpa [#allocation16], 0  ;;  %s955_s21 = smov [#allocation5]  }
   0x6   :  { %s39_s22 = sshll.u32 %s955_s21, 4  ;;  %s40_s22 = int_to_ptr.vmem [resolvable:$true] %s39_s22 }
   0x7   :  { %s771_s23 = scalar_lea.vmem %s40_s22, 3328  ;;  %p776_p1 = scmp.lt.s32.totalorder %s40_s22, %s40_s22 }
   0x8   :  { %p772_p0 = scmp.ne.s32.totalorder %s40_s22, %s771_s23  ;;  %p777_p2 = scmp.lt.s32.totalorder %s771_s23, %s771_s23 }
   0xa   :  { %p778_p3 = por %p777_p2, %p776_p1 }
   0xc   :  { %p779_p4 = pnand %p778_p3, %p772_p0 }
   0xe   :  { %782 = shalt.err (!%p779_p4)
}
   0xf   :  { %s956_s24 = smov 256   ;;  %s957_s25 = smov 16  }
  0x10   :  { %45 = dma.hbm_to_vmem [thread:$0]  %s1142_s1, 3328, %s40_s22, [#allocation6], %s956_s24, %s956_s24, %s957_s25  }
  0x11   :  { %s958_s28 = smov [#allocation8]   ;;  %s959_s30 = smov [#allocation2]  }
  0x12   :  { %s67_s29 = sshll.u32 %s958_s28, 4  ;;  %s30_s13 = sshll.u32 %s959_s30, 4  ;;  %s68_s29 = int_to_ptr.vmem [resolvable:$true] %s67_s29  ;;  %s31_s13 = int_to_ptr.vmem [resolvable:$true] %s30_s13 }
  0x13   :  { %s791_s14 = scalar_lea.vmem %s68_s29, 2048  ;;  %p796_p6 = scmp.lt.s32.totalorder %s68_s29, %s68_s29 }
  0x14   :  { %p792_p5 = scmp.ne.s32.totalorder %s68_s29, %s791_s14  ;;  %p797_p7 = scmp.lt.s32.totalorder %s791_s14, %s791_s14 }
  0x16   :  { %p798_p8 = por %p797_p7, %p796_p6 }
  0x18   :  { %p799_p9 = pnand %p798_p8, %p792_p5 }
  0x1a   :  { %802 = shalt.err (!%p799_p9)
}
  0x1b   :  { %s960_s15 = smov 128   ;;  %s961_s16 = smov 8  }
  0x1c   :  { %73 = dma.hbm_to_vmem [thread:$0]  %s1146_s5, 2048, %s68_s29, [#allocation9], %s960_s15, %s960_s15, %s961_s16  }
  0x1d   :  { %s811_s1 = scalar_lea.vmem %s31_s13, 32  ;;  %p816_p11 = scmp.lt.s32.totalorder %s31_s13, %s31_s13 }
  0x1e   :  { %p812_p10 = scmp.ne.s32.totalorder %s31_s13, %s811_s1  ;;  %p817_p12 = scmp.lt.s32.totalorder %s811_s1, %s811_s1 }
  0x20   :  { %p818_p13 = por %p817_p12, %p816_p11 }
  0x22   :  { %p819_p0 = pnand %p818_p13, %p812_p10 }
  0x24   :  { %822 = shalt.err (!%p819_p0)
}
  0x25   :  { %33 = dma.hbm_to_vmem [thread:$0]  %s1141_s0, 32, %s31_s13, [#allocation3]  }
  0x26   :  { %s962_s21 = smov [#allocation7]   ;;  %s963_s23 = smov [#allocation10]  }
  0x27   :  { %s53_s22 = sshll.u32 %s962_s21, 4  ;;  %s81_s24 = sshll.u32 %s963_s23, 4  ;;  %s54_s22 = int_to_ptr.vmem [resolvable:$true] %s53_s22  ;;  %s82_s24 = int_to_ptr.vmem [resolvable:$true] %s81_s24 }
  0x28   :  { %s831_s25 = scalar_lea.vmem %s54_s22, 2048  ;;  %p836_p2 = scmp.lt.s32.totalorder %s54_s22, %s54_s22 }
  0x29   :  { %p832_p1 = scmp.ne.s32.totalorder %s54_s22, %s831_s25  ;;  %p837_p3 = scmp.lt.s32.totalorder %s831_s25, %s831_s25 }
  0x2b   :  { %p838_p4 = por %p837_p3, %p836_p2 }
  0x2d   :  { %p839_p5 = pnand %p838_p4, %p832_p1 }
  0x2f   :  { %842 = shalt.err (!%p839_p5)
}
  0x30   :  { %59 = dma.hbm_to_vmem [thread:$0]  %s1144_s3, 2048, %s54_s22, [#allocation6], %s960_s15, %s960_s15, %s961_s16  }
  0x31   :  { %s851_s0 = scalar_lea.vmem %s82_s24, 2048  ;;  %p856_p7 = scmp.lt.s32.totalorder %s82_s24, %s82_s24 }
  0x32   :  { %p852_p6 = scmp.ne.s32.totalorder %s82_s24, %s851_s0  ;;  %p857_p8 = scmp.lt.s32.totalorder %s851_s0, %s851_s0 }
  0x34   :  { %p858_p9 = por %p857_p8, %p856_p7 }
  0x36   :  { %p859_p10 = pnand %p858_p9, %p852_p6 }
  0x38   :  { %862 = shalt.err (!%p859_p10)
}
  0x39   :  { %87 = dma.hbm_to_vmem [thread:$0]  %s1148_s7, 2048, %s82_s24, [#allocation9], %s960_s15, %s960_s15, %s961_s16  }
  0x3a   :  { %943 = dma.done.wait [#allocation3], 32  }
  0x3b   :  { %944 = vsyncadd [#allocation3], 4294967264 }
  0x3c   :  { %945 = dma.done.wait [#allocation6], 5376  }
  0x3d   :  { %946 = vsyncadd [#allocation6], 4294961920 }
  0x3e   :  { %947 = dma.done.wait [#allocation9], 4096  }
  0x3f   :  { %948 = vsyncadd [#allocation9], 4294963200  ;;  %v964_v0 = vmov 0.0   ;;  %v131_v1 = vld [vmem:[#allocation5 + $0xc8] sm:$0xff]  ;;  %v130_v2 = vld [vmem:[#allocation5 + $0xc0] sm:$0xff]  ;;  %vm144_vm0 = vcmask 850944   ;;  %v134_v60 = vlaneseq }
  0x40   :  { %212 = vmatprep.mubr.f32.mxu0 %v964_v0  ;;  %637 = vmatprep.subr.mxu1 %v964_v0  ;;  %v129_v3 = vld [vmem:[#allocation5 + $0xb8] sm:$0xff]  ;;  %v128_v4 = vld [vmem:[#allocation5 + $0xb0] sm:$0xff]  ;;  %v127_v5 = vld [vmem:[#allocation5 + $0xa8] sm:$0xff]  ;;  %vm965_vm1 = vmmov 0   ;;  %vm501_vm2 = vcmask 1041408  }
  0x41   :  { %154 = vmatprep.subr.mxu0 %v131_v1  ;;  %v126_v6 = vld [vmem:[#allocation5 + $0xa0] sm:$0xff]  ;;  %v125_v7 = vld [vmem:[#allocation5 + $0x98] sm:$0xff]  ;;  %v124_v8 = vld [vmem:[#allocation5 + $0x90] sm:$0xff]  ;;  %669 = vmatprep.mubr.msk.f32.mxu1 %vm965_vm1, %v964_v0  ;;  %v135_v61 = vshrl.u32 %v134_v60, 7 }
  0x42   :  { %155 = vmatpush1.msra.mxu0 %v130_v2  ;;  %v123_v9 = vld [vmem:[#allocation5 + $0x88] sm:$0xff]  ;;  %v122_v10 = vld [vmem:[#allocation5 + $0x80] sm:$0xff]  ;;  %v121_v11 = vld [vmem:[#allocation5 + $0x78] sm:$0xff] }
  0x43   :  { %156 = vmatprep.subr.mxu0 %v129_v3  ;;  %v120_v12 = vld [vmem:[#allocation5 + $0x70] sm:$0xff]  ;;  %v236_v13 = vld [vmem:[#allocation7 + $0x78] sm:$0xff]  ;;  %v235_v15 = vld [vmem:[#allocation7 + $0x70] sm:$0xff]  ;;  %v136_v62 = vsub.s32 0, %v135_v61  ;;  %v140_v1 = vsub.s32 1, %v135_v61 }
  0x44   :  { %157 = vmatpush1.msra.mxu0 %v128_v4  ;;  %v119_v14 = vld [vmem:[#allocation5 + $0x68] sm:$0xff]  ;;  %638 = vmatpush3.msra.mxu1 %v236_v13  ;;  %v118_v16 = vld [vmem:[#allocation5 + $0x60] sm:$0xff]  ;;  %v234_v17 = vld [vmem:[#allocation7 + $0x68] sm:$0xff] }
  0x45   :  { %158 = vmatprep.subr.mxu0 %v127_v5  ;;  %639 = vmatprep.subr.mxu1 %v964_v0  ;;  %v117_v18 = vld [vmem:[#allocation5 + $0x58] sm:$0xff]  ;;  %v116_v19 = vld [vmem:[#allocation5 + $0x50] sm:$0xff]  ;;  %v115_v21 = vld [vmem:[#allocation5 + $0x48] sm:$0xff] }
  0x46   :  { %159 = vmatpush1.msra.mxu0 %v126_v6  ;;  %640 = vmatpush3.msra.mxu1 %v235_v15  ;;  %v233_v20 = vld [vmem:[#allocation7 + $0x60] sm:$0xff]  ;;  %v114_v22 = vld [vmem:[#allocation5 + $0x40] sm:$0xff]  ;;  %v232_v23 = vld [vmem:[#allocation7 + $0x58] sm:$0xff] }
  0x47   :  { %160 = vmatprep.subr.mxu0 %v125_v7  ;;  %641 = vmatprep.subr.mxu1 %v964_v0  ;;  %v113_v24 = vld [vmem:[#allocation5 + $0x38] sm:$0xff]  ;;  %v112_v25 = vld [vmem:[#allocation5 + $0x30] sm:$0xff]  ;;  %v231_v26 = vld [vmem:[#allocation7 + $0x50] sm:$0xff] }
  0x48   :  { %161 = vmatpush1.msra.mxu0 %v124_v8  ;;  %642 = vmatpush3.msra.mxu1 %v234_v17  ;;  %v111_v27 = vld [vmem:[#allocation5 + $0x28] sm:$0xff]  ;;  %v110_v28 = vld [vmem:[#allocation5 + $0x20] sm:$0xff]  ;;  %v230_v29 = vld [vmem:[#allocation7 + $0x48] sm:$0xff] }
  0x49   :  { %162 = vmatprep.subr.mxu0 %v123_v9  ;;  %643 = vmatprep.subr.mxu1 %v964_v0  ;;  %v109_v30 = vld [vmem:[#allocation5 + $0x18] sm:$0xff]  ;;  %v108_v31 = vld [vmem:[#allocation5 + $0x10] sm:$0xff]  ;;  %v107_v33 = vld [vmem:[#allocation5 + $0x8] sm:$0xff] }
  0x4a   :  { %163 = vmatpush1.msra.mxu0 %v122_v10  ;;  %644 = vmatpush3.msra.mxu1 %v233_v20  ;;  %v229_v32 = vld [vmem:[#allocation7 + $0x40] sm:$0xff]  ;;  %v106_v34 = vld [vmem:[#allocation5] sm:$0xff]  ;;  %v228_v35 = vld [vmem:[#allocation7 + $0x38] sm:$0xff] }
  0x4b   :  { %164 = vmatprep.subr.mxu0 %v121_v11  ;;  %645 = vmatprep.subr.mxu1 %v964_v0  ;;  %v105_v36 = vld [vmem:[#allocation2] sm:$0x3]  ;;  %v329_v37 = vld [vmem:[#allocation8 + $0x78] sm:$0xff]  ;;  %v227_v38 = vld [vmem:[#allocation7 + $0x30] sm:$0xff] }
  0x4c   :  { %165 = vmatpush1.msra.mxu0 %v120_v12  ;;  %646 = vmatpush3.msra.mxu1 %v232_v23  ;;  %v328_v39 = vld [vmem:[#allocation8 + $0x70] sm:$0xff]  ;;  %v226_v40 = vld [vmem:[#allocation7 + $0x28] sm:$0xff]  ;;  %v225_v42 = vld [vmem:[#allocation7 + $0x20] sm:$0xff] }
  0x4d   :  { %166 = vmatprep.subr.mxu0 %v119_v14  ;;  %647 = vmatprep.subr.mxu1 %v964_v0  ;;  %v327_v41 = vld [vmem:[#allocation8 + $0x68] sm:$0xff]  ;;  %v326_v43 = vld [vmem:[#allocation8 + $0x60] sm:$0xff]  ;;  %v325_v44 = vld [vmem:[#allocation8 + $0x58] sm:$0xff] }
  0x4e   :  { %167 = vmatpush1.msra.mxu0 %v118_v16  ;;  %648 = vmatpush3.msra.mxu1 %v231_v26  ;;  %v324_v45 = vld [vmem:[#allocation8 + $0x50] sm:$0xff]  ;;  %v323_v46 = vld [vmem:[#allocation8 + $0x48] sm:$0xff]  ;;  %v322_v47 = vld [vmem:[#allocation8 + $0x40] sm:$0xff] }
  0x4f   :  { %168 = vmatprep.subr.mxu0 %v117_v18  ;;  %649 = vmatprep.subr.mxu1 %v964_v0  ;;  %v321_v48 = vld [vmem:[#allocation8 + $0x38] sm:$0xff]  ;;  %v320_v49 = vld [vmem:[#allocation8 + $0x30] sm:$0xff]  ;;  %v319_v50 = vld [vmem:[#allocation8 + $0x28] sm:$0xff] }
  0x50   :  { %169 = vmatpush1.msra.mxu0 %v116_v19  ;;  %650 = vmatpush3.msra.mxu1 %v230_v29  ;;  %v318_v51 = vld [vmem:[#allocation8 + $0x20] sm:$0xff]  ;;  %v317_v52 = vld [vmem:[#allocation8 + $0x18] sm:$0xff]  ;;  %v316_v54 = vld [vmem:[#allocation8 + $0x10] sm:$0xff] }
  0x51   :  { %170 = vmatprep.subr.mxu0 %v115_v21  ;;  %651 = vmatprep.subr.mxu1 %v964_v0  ;;  %v224_v53 = vld [vmem:[#allocation7 + $0x18] sm:$0xff]  ;;  %v223_v55 = vld [vmem:[#allocation7 + $0x10] sm:$0xff]  ;;  %v315_v56 = vld [vmem:[#allocation8 + $0x8] sm:$0xff] }
  0x52   :  { %171 = vmatpush1.msra.mxu0 %v114_v22  ;;  %652 = vmatpush3.msra.mxu1 %v229_v32  ;;  %v222_v57 = vld [vmem:[#allocation7 + $0x8] sm:$0xff]  ;;  %v314_v58 = vld [vmem:[#allocation8] sm:$0xff]  ;;  %v423_v10 = vld [vmem:[#allocation10 + $0x78] sm:$0xff] }
  0x53   :  { %172 = vmatprep.subr.mxu0 %v113_v24  ;;  %653 = vmatprep.subr.mxu1 %v964_v0  ;;  %v221_v59 = vld [vmem:[#allocation7] sm:$0xff]  ;;  %v132_v63 = vld [vmem:[%s1143_s2] sm:$0x3]  ;;  %v422_v11 = vld [vmem:[#allocation10 + $0x70] sm:$0xff] }
  0x54   :  { %173 = vmatpush1.msra.mxu0 %v112_v25  ;;  %654 = vmatpush3.msra.mxu1 %v228_v35  ;;  %v137_v2 = vrot.slane %v132_v63, %v136_v62  ;;  %v141_v3 = vrot.slane %v132_v63, %v140_v1  ;;  %v421_v12 = vld [vmem:[#allocation10 + $0x68] sm:$0xff]  ;;  %v420_v13 = vld [vmem:[#allocation10 + $0x60] sm:$0xff]  ;;  %v419_v14 = vld [vmem:[#allocation10 + $0x58] sm:$0xff] }
  0x55   :  { %174 = vmatprep.subr.mxu0 %v111_v27  ;;  %655 = vmatprep.subr.mxu1 %v964_v0  ;;  %v418_v15 = vld [vmem:[#allocation10 + $0x50] sm:$0xff]  ;;  %v417_v16 = vld [vmem:[#allocation10 + $0x48] sm:$0xff]  ;;  %v416_v17 = vld [vmem:[#allocation10 + $0x40] sm:$0xff] }
  0x56   :  { %175 = vmatpush1.msra.mxu0 %v110_v28  ;;  %656 = vmatpush3.msra.mxu1 %v227_v38  ;;  %v415_v18 = vld [vmem:[#allocation10 + $0x38] sm:$0xff]  ;;  %v414_v19 = vld [vmem:[#allocation10 + $0x30] sm:$0xff]  ;;  %v413_v20 = vld [vmem:[#allocation10 + $0x28] sm:$0xff] }
  0x57   :  { %176 = vmatprep.subr.mxu0 %v109_v30  ;;  %657 = vmatprep.subr.mxu1 %v964_v0  ;;  %v412_v21 = vld [vmem:[#allocation10 + $0x20] sm:$0xff]  ;;  %v411_v22 = vld [vmem:[#allocation10 + $0x18] sm:$0xff]  ;;  %v410_v23 = vld [vmem:[#allocation10 + $0x10] sm:$0xff] }
  0x58   :  { %177 = vmatpush1.msra.mxu0 %v108_v31  ;;  %658 = vmatpush3.msra.mxu1 %v226_v40  ;;  %v409_v24 = vld [vmem:[#allocation10 + $0x8] sm:$0xff]  ;;  %v408_v25 = vld [vmem:[#allocation10] sm:$0xff] }
  0x59   :  { %178 = vmatprep.subr.mxu0 %v107_v33  ;;  %659 = vmatprep.subr.mxu1 %v964_v0  ;;  %v584_v26 = vld [vmem:[%s1147_s6] ss:$0 sm:$0xff] }
  0x5a   :  { %179 = vmatpush1.msra.mxu0 %v106_v34  ;;  %660 = vmatpush3.msra.mxu1 %v225_v42  ;;  %v583_v28 = vld [vmem:[%s1145_s4] ss:$0 sm:$0xff]  ;;  %s966_s4 = smov [#allocation12]  }
  0x5b   :  { %582 = vmatmul.mubr.msk.f32.vlgmr.msra.gmra.mxu0 %vm144_vm0, %v105_v36  ;;  %672 = vmatprep.subr.mxu0 %v964_v0  ;;  %s540_s6 = sshll.u32 %s966_s4, 4  ;;  %s541_s6 = int_to_ptr.vmem [resolvable:$true] %s540_s6 }
  0x5c   :  { %673 = vmatpush3.msra.mxu0 %v329_v37  ;;  %661 = vmatprep.subr.mxu1 %v964_v0  ;;  %s863_s17 = scalar_lea.vmem %s541_s6, 32  ;;  %p868_p12 = scmp.lt.s32.totalorder %s541_s6, %s541_s6 }
  0x5d   :  { %674 = vmatprep.subr.mxu0 %v964_v0  ;;  %662 = vmatpush3.msra.mxu1 %v224_v53  ;;  %p864_p11 = scmp.ne.s32.totalorder %s541_s6, %s863_s17  ;;  %p869_p13 = scmp.lt.s32.totalorder %s863_s17, %s863_s17 }
  0x5e   :  { %675 = vmatpush3.msra.mxu0 %v328_v39  ;;  %663 = vmatprep.subr.mxu1 %v964_v0 }
  0x5f   :  { %676 = vmatprep.subr.mxu0 %v964_v0  ;;  %664 = vmatpush3.msra.mxu1 %v223_v55  ;;  %p870_p0 = por %p869_p13, %p868_p12 }
  0x60   :  { %677 = vmatpush3.msra.mxu0 %v327_v41  ;;  %665 = vmatprep.subr.mxu1 %v964_v0 }
  0x61   :  { %678 = vmatprep.subr.mxu0 %v964_v0  ;;  %666 = vmatpush3.msra.mxu1 %v222_v57  ;;  %p871_p1 = pnand %p870_p0, %p864_p11 }
  0x62   :  { %679 = vmatpush3.msra.mxu0 %v326_v43  ;;  %704 = vmatprep.mubr.msk.f32.mxu0 %vm965_vm1, %v964_v0 }
  0x63   :  { %680 = vmatprep.subr.mxu0 %v964_v0  ;;  %667 = vmatprep.subr.mxu1 %v964_v0 }
  0x64   :  { %681 = vmatpush3.msra.mxu0 %v325_v44  ;;  %668 = vmatpush3.msra.mxu1 %v221_v59 }
  0x65   :  { %682 = vmatprep.subr.mxu0 %v964_v0  ;;  %707 = vmatprep.subr.mxu1 %v964_v0 }
  0x66   :  { %683 = vmatpush3.msra.mxu0 %v324_v45 }
  0x67   :  { %684 = vmatprep.subr.mxu0 %v964_v0 }
  0x68   :  { %685 = vmatpush3.msra.mxu0 %v323_v46 }
  0x69   :  { %686 = vmatprep.subr.mxu0 %v964_v0 }
  0x6a   :  { %687 = vmatpush3.msra.mxu0 %v322_v47 }
  0x6b   :  { %688 = vmatprep.subr.mxu0 %v964_v0 }
  0x6c   :  { %689 = vmatpush3.msra.mxu0 %v321_v48 }
  0x6d   :  { %690 = vmatprep.subr.mxu0 %v964_v0 }
  0x6e   :  { %691 = vmatpush3.msra.mxu0 %v320_v49 }
  0x6f   :  { %692 = vmatprep.subr.mxu0 %v964_v0 }
  0x70   :  { %693 = vmatpush3.msra.mxu0 %v319_v50 }
  0x71   :  { %694 = vmatprep.subr.mxu0 %v964_v0 }
  0x72   :  { %695 = vmatpush3.msra.mxu0 %v318_v51 }
  0x73   :  { %696 = vmatprep.subr.mxu0 %v964_v0 }
  0x74   :  { %697 = vmatpush3.msra.mxu0 %v317_v52 }
  0x75   :  { %698 = vmatprep.subr.mxu0 %v964_v0 }
  0x76   :  { %699 = vmatpush3.msra.mxu0 %v316_v54 }
  0x77   :  { %700 = vmatprep.subr.mxu0 %v964_v0 }
  0x78   :  { %701 = vmatpush3.msra.mxu0 %v315_v56 }
  0x79   :  { %702 = vmatprep.subr.mxu0 %v964_v0 }
  0x7a   :  { %703 = vmatpush3.msra.mxu0 %v314_v58 }
 0x11b   :  { %v214_v4 = vpop.f32.mrf.mxu0 }
 0x11c   :  { %v215_v5 = vadd.f32 %v214_v4, %v137_v2 }
 0x11d   :  { %v216_v6 = vpop.f32.mrf.mxu0 }
 0x11e   :  { %v219_v7 = vmax.f32 %v215_v5, 0.0  ;;  %v217_v8 = vadd.f32 %v216_v6, %v141_v3 }
 0x120   :  { %v220_v9 = vmax.f32 %v217_v8, 0.0  ;;  %705 = vmatmul.mubr.f32.vlgmr.msra.gmra.mxu0 %v219_v7 }
 0x122   :  { %670 = vmatmul.mubr.f32.vlgmr.msra.gmra.mxu1 %v220_v9 }
 0x123   :  { %708 = vmatpush3.msra.mxu1 %v423_v10  ;;  %739 = vmatprep.mubr.msk.f32.mxu1 %vm965_vm1, %v964_v0 }
 0x124   :  { %709 = vmatprep.subr.mxu1 %v964_v0 }
 0x125   :  { %710 = vmatpush3.msra.mxu1 %v422_v11 }
 0x126   :  { %711 = vmatprep.subr.mxu1 %v964_v0 }
 0x127   :  { %712 = vmatpush3.msra.mxu1 %v421_v12 }
 0x128   :  { %713 = vmatprep.subr.mxu1 %v964_v0 }
 0x129   :  { %714 = vmatpush3.msra.mxu1 %v420_v13 }
 0x12a   :  { %715 = vmatprep.subr.mxu1 %v964_v0 }
 0x12b   :  { %716 = vmatpush3.msra.mxu1 %v419_v14 }
 0x12c   :  { %717 = vmatprep.subr.mxu1 %v964_v0 }
 0x12d   :  { %718 = vmatpush3.msra.mxu1 %v418_v15 }
 0x12e   :  { %719 = vmatprep.subr.mxu1 %v964_v0 }
 0x12f   :  { %720 = vmatpush3.msra.mxu1 %v417_v16 }
 0x130   :  { %721 = vmatprep.subr.mxu1 %v964_v0 }
 0x131   :  { %722 = vmatpush3.msra.mxu1 %v416_v17 }
 0x132   :  { %723 = vmatprep.subr.mxu1 %v964_v0 }
 0x133   :  { %724 = vmatpush3.msra.mxu1 %v415_v18 }
 0x134   :  { %725 = vmatprep.subr.mxu1 %v964_v0 }
 0x135   :  { %726 = vmatpush3.msra.mxu1 %v414_v19 }
 0x136   :  { %727 = vmatprep.subr.mxu1 %v964_v0 }
 0x137   :  { %728 = vmatpush3.msra.mxu1 %v413_v20 }
 0x138   :  { %729 = vmatprep.subr.mxu1 %v964_v0 }
 0x139   :  { %730 = vmatpush3.msra.mxu1 %v412_v21 }
 0x13a   :  { %731 = vmatprep.subr.mxu1 %v964_v0 }
 0x13b   :  { %732 = vmatpush3.msra.mxu1 %v411_v22 }
 0x13c   :  { %733 = vmatprep.subr.mxu1 %v964_v0 }
 0x13d   :  { %734 = vmatpush3.msra.mxu1 %v410_v23 }
 0x13e   :  { %735 = vmatprep.subr.mxu1 %v964_v0 }
 0x13f   :  { %736 = vmatpush3.msra.mxu1 %v409_v24 }
 0x140   :  { %737 = vmatprep.subr.mxu1 %v964_v0  ;;  %v585_v0 = vld [vmem:[%s1149_s8] ss:$0 sm:$0xff]  ;;  %s967_s8 = smov [#allocation11]  }
 0x141   :  { %738 = vmatpush3.msra.mxu1 %v408_v25  ;;  %s530_s16 = sshll.u32 %s967_s8, 4  ;;  %s531_s16 = int_to_ptr.vmem [resolvable:$true] %s530_s16 }
 0x1e0   :  { %v403_v27 = vpop.f32.mrf.mxu0 }
 0x1e1   :  { %v404_v29 = vadd.f32 %v584_v26, %v403_v27 }
 0x1e2   :  { %v310_v30 = vpop.f32.mrf.mxu1  ;;  %v706_v31 = vpop.f32.mrf.mxu0 }
 0x1e3   :  { %v407_v32 = vmax.f32 %v404_v29, 0.0  ;;  %v311_v33 = vadd.f32 %v583_v28, %v310_v30 }
 0x1e4   :  { %v671_v34 = vpop.f32.mrf.mxu1 }
 0x1e5   :  { %523 = vst [vmem:[#allocation15] sm:$0x3] %v311_v33  ;;  %740 = vmatmul.mubr.f32.vlgmr.msra.gmra.mxu1 %v407_v32 }
 0x2a5   :  { %v497_v35 = vpop.f32.mrf.mxu1 }
 0x2a6   :  { %v498_v36 = vadd.f32 %v585_v0, %v497_v35 }
 0x2a7   :  { %v741_v37 = vpop.f32.mrf.mxu1 }
 0x2a8   :  { %521 = vst [vmem:[#allocation12] sm:$0x3] %v498_v36  ;;  %v502_v38 = vsel %vm501_vm2, %v498_v36, -inf }
 0x2a9   :  { %503 = vmax.xlane.f32.xlu0 %v502_v38 }
 0x332   :  { %v504_v39 = vpop.xlane.xlu0 %503 }
 0x333   :  { %v505_v40 = vsub.f32 %v498_v36, %v504_v39 }
 0x335   :  { %v506_v41 = vmul.f32 1.442695, %v505_v40 }
 0x337   :  { %757 = vpow2.f32 %v506_v41 }
 0x344   :  { %v758_v42 = vpop.eup %757 }
 0x345   :  { %v508_v43 = vsel %vm501_vm2, %v758_v42, 0.0 }
 0x346   :  { %509 = vadd.xlane.f32.xlu0 %v508_v43 }
 0x3cf   :  { %v510_v44 = vpop.xlane.xlu0 %509 }
 0x3d0   :  { %759 = vrcp.f32 %v510_v44 }
 0x3dd   :  { %v760_v45 = vpop.eup %759 }
 0x3de   :  { %v512_v46 = vmul.f32 %v760_v45, %v758_v42 }
 0x3e0   :  { %v513_v47 = vadd.f32 1e-05, %v512_v46  ;;  %520 = vst [vmem:[#allocation11] sm:$0x3] %v512_v46 }
 0x3e2   :  { %761 = vlog2.f32 %v513_v47 }
 0x3ef   :  { %v762_v48 = vpop.eup %761 }
 0x3f0   :  { %v515_v49 = vmul.f32 0.6931472, %v762_v48 }
 0x3f2   :  { %v516_v50 = vmul.f32 %v515_v49, %v512_v46 }
 0x3f4   :  { %v517_v51 = vsel %vm501_vm2, %v516_v50, 0.0 }
 0x3f5   :  { %518 = vadd.xlane.f32.xlu1 %v517_v51 }
 0x3f6   :  { %874 = shalt.err (!%p871_p1)
}
 0x3f7   :  { %543 = dma.vmem_to_hbm [thread:$0]  %s541_s6, 32, %s1151_s10, [#allocation13]  }
 0x3f8   :  { %s883_s19 = scalar_lea.vmem %s531_s16, 32  ;;  %p888_p3 = scmp.lt.s32.totalorder %s531_s16, %s531_s16 }
 0x3f9   :  { %p884_p2 = scmp.ne.s32.totalorder %s531_s16, %s883_s19  ;;  %p889_p4 = scmp.lt.s32.totalorder %s883_s19, %s883_s19 }
 0x3fb   :  { %p890_p5 = por %p889_p4, %p888_p3 }
 0x3fd   :  { %p891_p6 = pnand %p890_p5, %p884_p2 }
 0x3ff   :  { %894 = shalt.err (!%p891_p6)
}
 0x400   :  { %533 = dma.vmem_to_hbm [thread:$0]  %s531_s16, 32, %s1150_s9, [#allocation4]  }
 0x401   :  { %s968_s22 = smov [#allocation15]  }
 0x402   :  { %s560_s23 = sshll.u32 %s968_s22, 4  ;;  %s561_s23 = int_to_ptr.vmem [resolvable:$true] %s560_s23 }
 0x403   :  { %s903_s24 = scalar_lea.vmem %s561_s23, 32  ;;  %p908_p8 = scmp.lt.s32.totalorder %s561_s23, %s561_s23 }
 0x404   :  { %p904_p7 = scmp.ne.s32.totalorder %s561_s23, %s903_s24  ;;  %p909_p9 = scmp.lt.s32.totalorder %s903_s24, %s903_s24 }
 0x406   :  { %p910_p10 = por %p909_p9, %p908_p8 }
 0x408   :  { %p911_p11 = pnand %p910_p10, %p904_p7 }
 0x40a   :  { %914 = shalt.err (!%p911_p11)
}
 0x40b   :  { %563 = dma.vmem_to_hbm [thread:$0]  %s561_s23, 32, %s1153_s12, [#allocation16]  }
 0x40c   :  { %s969_s5 = smov [#allocation14]  }
 0x40d   :  { %s550_s26 = sshll.u32 %s969_s5, 4  ;;  %s551_s26 = int_to_ptr.vmem [resolvable:$true] %s550_s26 }
 0x40e   :  { %s923_s9 = scalar_lea.vmem %s551_s26, 32  ;;  %p928_p13 = scmp.lt.s32.totalorder %s551_s26, %s551_s26 }
 0x40f   :  { %p924_p12 = scmp.ne.s32.totalorder %s551_s26, %s923_s9  ;;  %p929_p0 = scmp.lt.s32.totalorder %s923_s9, %s923_s9 }
 0x411   :  { %p930_p1 = por %p929_p0, %p928_p13 }
 0x413   :  { %p931_p2 = pnand %p930_p1, %p924_p12 }
 0x47e   :  { %v519_v52 = vpop.xlane.xlu1 %518 }
 0x47f   :  { %522 = vst [vmem:[#allocation14] sm:$0x3] %v519_v52 }
 0x480   :  { %934 = shalt.err (!%p931_p2)
}
 0x481   :  { %553 = dma.vmem_to_hbm [thread:$0]  %s551_s26, 32, %s1152_s11, [#allocation13]  }
 0x482   :  { %949 = dma.done.wait [#allocation4], 32  }
 0x483   :  { %950 = vsyncadd [#allocation4], 4294967264 }
 0x484   :  { %951 = dma.done.wait [#allocation13], 64  }
 0x485   :  { %952 = vsyncadd [#allocation13], 4294967232 }
 0x486   :  { %953 = dma.done.wait [#allocation16], 32  }
 0x487   :  { %954 = vsyncadd [#allocation16], 4294967264 }
 0x488   :  { %576 = vsyncpa [#allocation3], 1 }
 0x489   :  { %577 = vsyncpa [#allocation6], 1 }
 0x48a   :  { %578 = vsyncpa [#allocation9], 1 }
 0x48b   :  { %579 = vsyncpa [#allocation4], 1 }
 0x48c   :  { %580 = vsyncpa [#allocation13], 1 }
 0x48d   :  { %581 = vsyncpa [#allocation16], 1 }

</bundles_post_ra>
